<compile_context>
chip_gen: v5e
topology: v5e:2x2
jax: 0.10.0
libtpu: 0.0.40
codegen_flags: <defaults>
</compile_context>

<pallas_src>
import functools

import jax
import jax.numpy as jnp
from jax.experimental import pallas as pl
from jax.experimental.pallas import tpu as pltpu


# ----------------------------------------------------------------------------
# Kernels (all element-wise math in f32; cast only at the final store).
# ----------------------------------------------------------------------------
def _train_fused_kernel(x_ref, rmin_ref, rmax_ref,
                        out_ref, nrmin_ref, nrmax_ref,
                        *, a, b, eaf, mode):
    """Single-pass training forward (modes 0/1): whole batch in one block."""
    x = x_ref[...].astype(jnp.float32)                       # (N, tf)
    mins = jnp.min(x, axis=0, keepdims=True)                 # amin(dim=0)
    # max over (x - mins) == max(x) - mins (per-column constant shift; exact).
    maxs = jnp.max(x, axis=0, keepdims=True) - mins

    # out = a * (x - mins) / maxs - b  ==  x * scale + shift
    # (one divide per feature column, not per element).
    scale = a / maxs
    shift = -(mins * scale + b)
    out_ref[...] = (x * scale + shift).astype(out_ref.dtype)

    rmin = rmin_ref[...].astype(jnp.float32)
    rmax = rmax_ref[...].astype(jnp.float32)
    if mode == 0:                       # min/max tracking
        nrmin = jnp.minimum(mins, rmin)
        nrmax = jnp.maximum(maxs, rmax)
    else:                               # mode == 1: EMA
        nrmin = eaf * mins + (1.0 - eaf) * rmin
        nrmax = eaf * maxs + (1.0 - eaf) * rmax
    nrmin_ref[...] = nrmin.astype(nrmin_ref.dtype)
    nrmax_ref[...] = nrmax.astype(nrmax_ref.dtype)


def _batch_fused_kernel(x_ref, out_ref, *, a, b):
    """Single-pass normalize with batch stats only (mode==2, train or eval)."""
    x = x_ref[...].astype(jnp.float32)
    mins = jnp.min(x, axis=0, keepdims=True)
    maxs = jnp.max(x, axis=0, keepdims=True) - mins
    scale = a / maxs
    shift = -(mins * scale + b)
    out_ref[...] = (x * scale + shift).astype(out_ref.dtype)


def _eval_kernel(x_ref, rmin_ref, rmax_ref, out_ref, *, a, b):
    """Eval forward (mode != 2): normalize with running stats (element-wise)."""
    rmin = rmin_ref[...].astype(jnp.float32)
    rmax = rmax_ref[...].astype(jnp.float32)
    scale = a / rmax
    shift = -(rmin * scale + b)
    out_ref[...] = (x_ref[...].astype(jnp.float32) * scale + shift).astype(out_ref.dtype)


def _col_min_max(x, *, n_rows, tn, batch_idx):
    """Per-column min/max of one (tn, tf) batch tile, masking ragged rows."""
    x = x.astype(jnp.float32)
    if n_rows % tn != 0:
        # Last batch block is ragged: rows >= n_rows hold unspecified padding.
        row = jax.lax.broadcasted_iota(jnp.int32, x.shape, 0) + batch_idx * tn
        valid = row < n_rows
        cmin = jnp.min(jnp.where(valid, x, jnp.inf), axis=0, keepdims=True)
        cmax = jnp.max(jnp.where(valid, x, -jnp.inf), axis=0, keepdims=True)
    else:
        cmin = jnp.min(x, axis=0, keepdims=True)
        cmax = jnp.max(x, axis=0, keepdims=True)
    return cmin, cmax


def _stats_kernel(x_ref, bmin_ref, bmax_ref, *, n_rows, tn):
    """Two-phase pass 1: accumulate per-feature batch min / max (P3 pattern)."""
    bi = pl.program_id(1)                                    # batch axis (innermost)

    @pl.when(bi == 0)
    def _init():
        bmin_ref[...] = jnp.full(bmin_ref.shape, jnp.inf, bmin_ref.dtype)
        bmax_ref[...] = jnp.full(bmax_ref.shape, -jnp.inf, bmax_ref.dtype)

    cmin, cmax = _col_min_max(x_ref[...], n_rows=n_rows, tn=tn, batch_idx=bi)
    bmin_ref[...] = jnp.minimum(bmin_ref[...], cmin)
    bmax_ref[...] = jnp.maximum(bmax_ref[...], cmax)


def _stats_track_kernel(x_ref, rmin_ref, rmax_ref,
                        bmin_ref, bmax_ref, nrmin_ref, nrmax_ref,
                        *, n_rows, tn, eaf, mode):
    """Two-phase pass 1 with the running-stat update folded into the last step."""
    _stats_kernel(x_ref, bmin_ref, bmax_ref, n_rows=n_rows, tn=tn)

    @pl.when(pl.program_id(1) == pl.num_programs(1) - 1)
    def _finalize():
        mins = bmin_ref[...]
        maxs = bmax_ref[...] - mins
        rmin = rmin_ref[...].astype(jnp.float32)
        rmax = rmax_ref[...].astype(jnp.float32)
        if mode == 0:
            nrmin = jnp.minimum(mins, rmin)
            nrmax = jnp.maximum(maxs, rmax)
        else:
            nrmin = eaf * mins + (1.0 - eaf) * rmin
            nrmax = eaf * maxs + (1.0 - eaf) * rmax
        nrmin_ref[...] = nrmin.astype(nrmin_ref.dtype)
        nrmax_ref[...] = nrmax.astype(nrmax_ref.dtype)


def _apply_kernel(x_ref, bmin_ref, bmax_ref, out_ref, *, a, b):
    """Two-phase pass 2: fully parallel fused per-feature affine."""
    mins = bmin_ref[...]
    maxs = bmax_ref[...] - mins
    scale = a / maxs                                         # (1, tf) f32
    shift = -(mins * scale + b)
    out_ref[...] = (x_ref[...].astype(jnp.float32) * scale + shift).astype(out_ref.dtype)


# ----------------------------------------------------------------------------
# Generation-aware VMEM budgets & tile selection
# ----------------------------------------------------------------------------
@functools.lru_cache(maxsize=None)
def _vmem_budgets():
    """(block_budget_bytes, scoped_vmem_limit_bytes) scaled to this chip's VMEM."""
    try:
        cap = getattr(pltpu.get_tpu_info(), "vmem_capacity_bytes", None)
    except Exception:                      # interpret mode / older runtimes
        cap = None
    if not cap:
        cap = 64 << 20                     # conservative (v7x-sized) fallback
    vmem_limit = min(cap * 3 // 4, 100 << 20)    # v5e/v6e ~96 MiB, v7x ~48 MiB
    block_budget = min(cap * 3 // 10, 40 << 20)  # v5e/v6e ~38 MiB, v7x ~19 MiB
    return int(block_budget), int(vmem_limit)


def _single_pass_feature_tile(N, F, itemsize, block_budget):
    """Feature (lane) tile for the single-pass kernels, or None -> two-phase."""
    if F <= 128:
        return F                           # cannot split the lane axis further
    # Per-lane VMEM: double-buffered x + out blocks, plus an f32 upcast temp.
    per_lane = 2 * 2 * N * itemsize + 4 * N + 64
    tf_cap = block_budget // per_lane
    if tf_cap < min(256, F):
        # Can't keep a >=256-lane (or full-F) block resident: per-row DMA runs
        # would degrade to <=512 B (~29% of HBM BW measured) -> two-phase plan.
        return None
    # Multi-step feature grid: >=2 steps whenever F allows (keeps both v7x
    # TensorCores busy + pipelining), ~F/512 steps (capped at 16) for large F
    # so tiles stay >=512 lanes.
    min_steps = max(2, min(16, F // 512))
    tf = min(tf_cap, 8192, max(128, F // min_steps))
    return max(128, (tf // 128) * 128)


def _lane_tile(F):
    """Lane tile for the batch-tiled (two-phase / eval) kernels."""
    if F <= 128:
        return F
    div = 4 if F >= 4096 else 2            # >=2 (>=4 for big F) feature steps
    return min(2048, max(128, (F // div // 128) * 128))


def _batch_tile(N, tf, itemsize, block_budget):
    """Batch (sublane) tile for the batch-tiled kernels (multiple of 8)."""
    cap = block_budget // (5 * tf * itemsize)            # x+out dbl-buffered + slack
    cap = min(cap, 1024, max(8, (2 << 20) // (tf * itemsize)))   # ~<=2 MiB blocks
    if N <= max(8, cap):
        return N                                          # single batch block
    return max(8, (cap // 8) * 8)


# ----------------------------------------------------------------------------
# pallas_call builders
# ----------------------------------------------------------------------------
def _compiler_params(semantics, vmem_limit):
    return pltpu.CompilerParams(dimension_semantics=semantics,
                                vmem_limit_bytes=int(vmem_limit))


def _train_single_pass(x, rmin, rmax, *, a, b, eaf, mode, tf, vmem_limit):
    N, F = x.shape
    x_spec = pl.BlockSpec((N, tf), lambda j: (0, j))
    s_spec = pl.BlockSpec((1, tf), lambda j: (0, j))
    kern = functools.partial(_train_fused_kernel, a=float(a), b=float(b),
                             eaf=float(eaf), mode=int(mode))
    ce = pl.CostEstimate(flops=int(6 * N * F), transcendentals=0,
                         bytes_accessed=int(2 * N * F * x.dtype.itemsize + 4 * F * 4))
    return pl.pallas_call(
        kern,
        grid=(pl.cdiv(F, tf),),
        in_specs=[x_spec, s_spec, s_spec],
        out_specs=[x_spec, s_spec, s_spec],
        out_shape=[jax.ShapeDtypeStruct((N, F), x.dtype),
                   jax.ShapeDtypeStruct((1, F), rmin.dtype),
                   jax.ShapeDtypeStruct((1, F), rmax.dtype)],
        compiler_params=_compiler_params(("parallel",), vmem_limit),
        cost_estimate=ce,
    )(x, rmin, rmax)


def _batch_single_pass(x, *, a, b, tf, vmem_limit):
    N, F = x.shape
    x_spec = pl.BlockSpec((N, tf), lambda j: (0, j))
    kern = functools.partial(_batch_fused_kernel, a=float(a), b=float(b))
    ce = pl.CostEstimate(flops=int(4 * N * F), transcendentals=0,
                         bytes_accessed=int(2 * N * F * x.dtype.itemsize))
    return pl.pallas_call(
        kern,
        grid=(pl.cdiv(F, tf),),
        in_specs=[x_spec],
        out_specs=x_spec,
        out_shape=jax.ShapeDtypeStruct((N, F), x.dtype),
        compiler_params=_compiler_params(("parallel",), vmem_limit),
        cost_estimate=ce,
    )(x)


def _stats_pass(x, rmin, rmax, *, eaf, mode, track, tf, tn, vmem_limit):
    """Two-phase pass 1: per-feature batch min/max (+ optional running stats)."""
    N, F = x.shape
    grid = (pl.cdiv(F, tf), pl.cdiv(N, tn))        # batch innermost = reduction
    x_spec = pl.BlockSpec((tn, tf), lambda j, i: (i, j))
    s_spec = pl.BlockSpec((1, tf), lambda j, i: (0, j))
    cparams = _compiler_params(("parallel", "arbitrary"), vmem_limit)
    ce = pl.CostEstimate(flops=int(2 * N * F), transcendentals=0,
                         bytes_accessed=int(N * F * x.dtype.itemsize + 6 * F * 4))
    if track:
        kern = functools.partial(_stats_track_kernel, n_rows=N, tn=tn,
                                 eaf=float(eaf), mode=int(mode))
        return pl.pallas_call(
            kern, grid=grid,
            in_specs=[x_spec, s_spec, s_spec],
            out_specs=[s_spec, s_spec, s_spec, s_spec],
            out_shape=[jax.ShapeDtypeStruct((1, F), jnp.float32),   # batch col-min
                       jax.ShapeDtypeStruct((1, F), jnp.float32),   # batch col-max
                       jax.ShapeDtypeStruct((1, F), rmin.dtype),    # new running_min
                       jax.ShapeDtypeStruct((1, F), rmax.dtype)],   # new running_max
            compiler_params=cparams, cost_estimate=ce,
        )(x, rmin, rmax)
    kern = functools.partial(_stats_kernel, n_rows=N, tn=tn)
    return pl.pallas_call(
        kern, grid=grid,
        in_specs=[x_spec],
        out_specs=[s_spec, s_spec],
        out_shape=[jax.ShapeDtypeStruct((1, F), jnp.float32),
                   jax.ShapeDtypeStruct((1, F), jnp.float32)],
        compiler_params=cparams, cost_estimate=ce,
    )(x)


def _apply_pass(x, bmin, bmax, *, a, b, tf, tn, vmem_limit):
    """Two-phase pass 2: element-wise affine, fully parallel 2-D grid."""
    N, F = x.shape
    grid = (pl.cdiv(F, tf), pl.cdiv(N, tn))
    x_spec = pl.BlockSpec((tn, tf), lambda j, i: (i, j))
    s_spec = pl.BlockSpec((1, tf), lambda j, i: (0, j))
    kern = functools.partial(_apply_kernel, a=float(a), b=float(b))
    ce = pl.CostEstimate(flops=int(2 * N * F), transcendentals=0,
                         bytes_accessed=int(2 * N * F * x.dtype.itemsize + 2 * F * 4))
    return pl.pallas_call(
        kern, grid=grid,
        in_specs=[x_spec, s_spec, s_spec],
        out_specs=x_spec,
        out_shape=jax.ShapeDtypeStruct((N, F), x.dtype),
        compiler_params=_compiler_params(("parallel", "parallel"), vmem_limit),
        cost_estimate=ce,
    )(x, bmin, bmax)


def _eval_pass(x, rmin, rmax, *, a, b, tf, tn, vmem_limit):
    """Eval (mode != 2): element-wise normalize with running stats."""
    N, F = x.shape
    grid = (pl.cdiv(F, tf), pl.cdiv(N, tn))
    x_spec = pl.BlockSpec((tn, tf), lambda j, i: (i, j))
    s_spec = pl.BlockSpec((1, tf), lambda j, i: (0, j))
    kern = functools.partial(_eval_kernel, a=float(a), b=float(b))
    ce = pl.CostEstimate(flops=int(2 * N * F), transcendentals=0,
                         bytes_accessed=int(2 * N * F * x.dtype.itemsize + 2 * F * 4))
    return pl.pallas_call(
        kern, grid=grid,
        in_specs=[x_spec, s_spec, s_spec],
        out_specs=x_spec,
        out_shape=jax.ShapeDtypeStruct((N, F), x.dtype),
        compiler_params=_compiler_params(("parallel", "parallel"), vmem_limit),
        cost_estimate=ce,
    )(x, rmin, rmax)


# ----------------------------------------------------------------------------
# Wrapper (plan selection + running-stat bookkeeping)
# ----------------------------------------------------------------------------
def approx_minmax_norm1d(x, running_min, running_max, num_batches_tracked, *,
                         a=2.0, b=1.0, mode=1, training=True,
                         feature_tile=None, batch_tile=None,
                         force_two_phase=False):
    """Functional equivalent of ApproxMinMaxNorm1d.forward.

    Returns (out, new_running_min, new_running_max, new_num_batches_tracked).
    `training`, `mode`, `num_batches_tracked` are host-side (Python) values,
    mirroring the PyTorch module-state / training-flag semantics.
    `feature_tile`, `batch_tile`, `force_two_phase` are test/tuning overrides.
    """
    N, F = x.shape
    itemsize = x.dtype.itemsize
    block_budget, vmem_limit = _vmem_budgets()

    # ---- execution plan -----------------------------------------------------
    two_phase = bool(force_two_phase or batch_tile is not None)
    tf_single = None
    if not two_phase:
        tf_single = (feature_tile if feature_tile is not None else
                     _single_pass_feature_tile(N, F, itemsize, block_budget))
        two_phase = tf_single is None
    if two_phase:
        tf = feature_tile if feature_tile is not None else _lane_tile(F)
        tn = batch_tile if batch_tile is not None else _batch_tile(
            N, tf, itemsize, block_budget)

    def _batch_stats_out():
        if not two_phase:
            return _batch_single_pass(x, a=a, b=b, tf=tf_single,
                                      vmem_limit=vmem_limit)
        bmin, bmax = _stats_pass(x, None, None, eaf=0.0, mode=2, track=False,
                                 tf=tf, tn=tn, vmem_limit=vmem_limit)
        return _apply_pass(x, bmin, bmax, a=a, b=b, tf=tf, tn=tn,
                           vmem_limit=vmem_limit)

    if training:
        new_nbt = int(num_batches_tracked) + 1
        eaf = 1.0 if new_nbt == 1 else 0.1
        if mode in (0, 1):
            if not two_phase:
                out, nrmin, nrmax = _train_single_pass(
                    x, running_min, running_max, a=a, b=b, eaf=eaf, mode=mode,
                    tf=tf_single, vmem_limit=vmem_limit)
            else:
                bmin, bmax, nrmin, nrmax = _stats_pass(
                    x, running_min, running_max, eaf=eaf, mode=mode, track=True,
                    tf=tf, tn=tn, vmem_limit=vmem_limit)
                out = _apply_pass(x, bmin, bmax, a=a, b=b, tf=tf, tn=tn,
                                  vmem_limit=vmem_limit)
            return out, nrmin, nrmax, new_nbt
        # mode == 2 (or any other value): batch stats only, buffers untouched.
        return _batch_stats_out(), running_min, running_max, new_nbt

    # ------------------------------ eval path --------------------------------
    if mode != 2:
        if two_phase:
            tf_e, tn_e = tf, tn
        else:
            tf_e, tn_e = tf_single, N
        out = _eval_pass(x, running_min, running_max, a=a, b=b,
                         tf=tf_e, tn=tn_e, vmem_limit=vmem_limit)
    else:
        out = _batch_stats_out()
    return out, running_min, running_max, int(num_batches_tracked)


# ----------------------------------------------------------------------------
# Pure-JAX reference (for correctness checks only)
# ----------------------------------------------------------------------------
def _ref_forward(x, rmin, rmax, nbt, a, b, mode, training):
    x = x.astype(jnp.float32)
    if training:
        nbt = nbt + 1
        eaf = 1.0 if nbt == 1 else 0.1
        mins = jnp.min(x, axis=0, keepdims=True)
        if mode == 0:
            rmin = jnp.where(mins < rmin, mins, rmin)
        elif mode == 1:
            rmin = eaf * mins + (1 - eaf) * rmin
        x = x - mins
        maxs = jnp.max(x, axis=0, keepdims=True)
        if mode == 0:
            rmax = jnp.where(maxs > rmax, maxs, rmax)
        elif mode == 1:
            rmax = eaf * maxs + (1 - eaf) * rmax
        x = x / maxs
    else:
        if mode != 2:
            x = (x - rmin) / rmax
        else:
            mins = jnp.min(x, axis=0, keepdims=True)
            x = x - mins
            maxs = jnp.max(x, axis=0, keepdims=True)
            x = x / maxs
    return a * x - b, rmin, rmax, nbt


# ----------------------------------------------------------------------------
if __name__ == "__main__":
    key = jax.random.PRNGKey(0)
    a, b = 2.0, 1.0
    tol = dict(atol=2e-5, rtol=2e-5)

    def _check(name, got, want, **kw):
        kw = kw or tol
        assert jnp.allclose(got, want, **kw), (
            f"{name}: max|diff|={jnp.max(jnp.abs(got - want))}")

    # ---------------- single-pass paths: N=8, F=256 (lane-aligned) -----------
    N, F = 8, 256
    k1, k2, k3 = jax.random.split(key, 3)
    x = jax.random.normal(k1, (N, F), dtype=jnp.float32)
    rmin0 = jnp.ones((1, F), jnp.float32)     # buffers init to ones, as in __init__
    rmax0 = jnp.ones((1, F), jnp.float32)

    # training, mode 1 (EMA update of running stats)
    out, nrmin, nrmax, nbt = approx_minmax_norm1d(
        x, rmin0, rmax0, 0, a=a, b=b, mode=1, training=True)
    jax.block_until_ready((out, nrmin, nrmax))
    r_out, r_rmin, r_rmax, r_nbt = _ref_forward(x, rmin0, rmax0, 0, a, b, 1, True)
    _check("train m1 out", out, r_out)
    _check("train m1 rmin", nrmin, r_rmin)
    _check("train m1 rmax", nrmax, r_rmax)
    assert nbt == r_nbt == 1

    # training, mode 0 (min/max tracking)
    out0, nrmin0_, nrmax0_, _ = approx_minmax_norm1d(
        x, rmin0, rmax0, 0, a=a, b=b, mode=0, training=True)
    r_out0, r_rmin0_, r_rmax0_, _ = _ref_forward(x, rmin0, rmax0, 0, a, b, 0, True)
    _check("train m0 out", out0, r_out0)
    _check("train m0 rmin", nrmin0_, r_rmin0_)
    _check("train m0 rmax", nrmax0_, r_rmax0_)

    # eval, mode 1 (running stats from the training step above)
    out_e, _, _, _ = approx_minmax_norm1d(
        x, nrmin, nrmax, nbt, a=a, b=b, mode=1, training=False)
    r_out_e, _, _, _ = _ref_forward(x, r_rmin, r_rmax, r_nbt, a, b, 1, False)
    _check("eval m1 out", out_e, r_out_e)

    # eval, mode 2 (batch stats, buffers unused)
    out_e2, _, _, _ = approx_minmax_norm1d(
        x, nrmin, nrmax, nbt, a=a, b=b, mode=2, training=False)
    r_out_e2, _, _, _ = _ref_forward(x, r_rmin, r_rmax, r_nbt, a, b, 2, False)
    _check("eval m2 out", out_e2, r_out_e2)

    # -------- single-pass with F not a multiple of 128 (ragged lane tile) ----
    Fr = 200
    xr = jax.random.normal(k2, (N, Fr), dtype=jnp.float32)
    rminr = jnp.ones((1, Fr), jnp.float32)
    rmaxr = jnp.ones((1, Fr), jnp.float32)
    outr, nrminr, nrmaxr, _ = approx_minmax_norm1d(
        xr, rminr, rmaxr, 3, a=a, b=b, mode=1, training=True)
    r_outr, r_rminr, r_rmaxr, _ = _ref_forward(xr, rminr, rmaxr, 3, a, b, 1, True)
    _check("ragged-F train out", outr, r_outr)
    _check("ragged-F train rmin", nrminr, r_rminr)
    _check("ragged-F train rmax", nrmaxr, r_rmaxr)

    # -------- two-phase (large-N) plan, forced with small tiles --------------
    N2, F2 = 40, 200
    x2 = jax.random.normal(k3, (N2, F2), dtype=jnp.float32)
    rmin2 = jnp.ones((1, F2), jnp.float32)
    rmax2 = jnp.ones((1, F2), jnp.float32)
    out2, nrmin2, nrmax2, _ = approx_minmax_norm1d(
        x2, rmin2, rmax2, 5, a=a, b=b, mode=1, training=True,
        feature_tile=128, batch_tile=16, force_two_phase=True)
    r_out2, r_rmin2, r_rmax2, _ = _ref_forward(x2, rmin2, rmax2, 5, a, b, 1, True)
    _check("two-phase train out", out2, r_out2)
    _check("two-phase train rmin", nrmin2, r_rmin2)
    _check("two-phase train rmax", nrmax2, r_rmax2)

    out2e, _, _, _ = approx_minmax_norm1d(
        x2, rmin2, rmax2, 5, a=a, b=b, mode=2, training=False,
        feature_tile=128, batch_tile=16, force_two_phase=True)
    r_out2e, _, _, _ = _ref_forward(x2, rmin2, rmax2, 5, a, b, 2, False)
    _check("two-phase eval m2 out", out2e, r_out2e)

    # -------- bf16 input (element-wise math still done in f32) ---------------
    xb = x.astype(jnp.bfloat16)
    outb, nrminb, nrmaxb, _ = approx_minmax_norm1d(
        xb, rmin0, rmax0, 0, a=a, b=b, mode=1, training=True)
    r_outb, r_rminb, r_rmaxb, _ = _ref_forward(
        xb.astype(jnp.float32), rmin0, rmax0, 0, a, b, 1, True)
    _check("bf16 train out", outb.astype(jnp.float32), r_outb,
           atol=2e-2, rtol=2e-2)
    _check("bf16 train rmin", nrminb, r_rminb)
    _check("bf16 train rmax", nrmaxb, r_rmaxb)

    jax.block_until_ready((outr, out2, out2e, outb))
    print("KERNEL_OK")
</pallas_src>

<mosaic_0001>
module attributes {stable_mosaic.version = 11 : i64} {
  func.func @_train_fused_kernel(%arg0: i32, %arg1: memref<8x128xf32, #tpu.memory_space<vmem>>, %arg2: memref<1x128xf32, #tpu.memory_space<vmem>>, %arg3: memref<1x128xf32, #tpu.memory_space<vmem>>, %arg4: memref<8x128xf32, #tpu.memory_space<vmem>>, %arg5: memref<1x128xf32, #tpu.memory_space<vmem>>, %arg6: memref<1x128xf32, #tpu.memory_space<vmem>>) attributes {dimension_semantics = [#tpu.dimension_semantics<parallel>], iteration_bounds = array<i64: 2>, scalar_prefetch = 0 : i64, scratch_operands = 0 : i64, tpu.core_type = #tpu.core_type<tc>, window_params = [{transform_indices = @transform_0, window_bounds = array<i64: 8, 128>}, {transform_indices = @transform_1, window_bounds = array<i64: 1, 128>}, {transform_indices = @transform_2, window_bounds = array<i64: 1, 128>}, {transform_indices = @transform_3, window_bounds = array<i64: 8, 128>}, {transform_indices = @transform_4, window_bounds = array<i64: 1, 128>}, {transform_indices = @transform_5, window_bounds = array<i64: 1, 128>}]} {
    %c0 = arith.constant 0 : index
    %c0_0 = arith.constant 0 : index
    %0 = vector.load %arg1[%c0, %c0_0] : memref<8x128xf32, #tpu.memory_space<vmem>>, vector<8x128xf32>
    %cst = arith.constant dense<0x7F800000> : vector<128xf32>
    %1 = vector.multi_reduction <minimumf>, %0, %cst [0] : vector<8x128xf32> to vector<128xf32>
    %2 = vector.shape_cast %1 : vector<128xf32> to vector<1x128xf32>
    %cst_1 = arith.constant dense<0xFF800000> : vector<128xf32>
    %3 = vector.multi_reduction <maximumf>, %0, %cst_1 [0] : vector<8x128xf32> to vector<128xf32>
    %4 = vector.shape_cast %3 : vector<128xf32> to vector<1x128xf32>
    %5 = arith.subf %4, %2 : vector<1x128xf32>
    %cst_2 = arith.constant 2.000000e+00 : f32
    %6 = vector.broadcast %cst_2 : f32 to vector<1x128xf32>
    %7 = arith.divf %6, %5 : vector<1x128xf32>
    %8 = arith.mulf %2, %7 : vector<1x128xf32>
    %cst_3 = arith.constant 1.000000e+00 : f32
    %9 = vector.broadcast %cst_3 : f32 to vector<1x128xf32>
    %10 = arith.addf %8, %9 : vector<1x128xf32>
    %cst_4 = arith.constant 0.000000e+00 : f32
    %11 = vector.broadcast %cst_4 : f32 to vector<1x128xf32>
    %12 = arith.subf %11, %10 : vector<1x128xf32>
    %13 = vector.broadcast %7 : vector<1x128xf32> to vector<8x128xf32>
    %14 = arith.mulf %0, %13 : vector<8x128xf32>
    %15 = vector.broadcast %12 : vector<1x128xf32> to vector<8x128xf32>
    %16 = arith.addf %14, %15 : vector<8x128xf32>
    %c0_5 = arith.constant 0 : index
    %c0_6 = arith.constant 0 : index
    %17 = vector.load %arg4[%c0_5, %c0_6] : memref<8x128xf32, #tpu.memory_space<vmem>>, vector<8x128xf32>
    tpu.vector_store %arg4[%c0_5, %c0_6], %16 {strides = array<i32>} : memref<8x128xf32, #tpu.memory_space<vmem>>, vector<8x128xf32>,
    %c0_7 = arith.constant 0 : index
    %c0_8 = arith.constant 0 : index
    %18 = vector.load %arg2[%c0_7, %c0_8] : memref<1x128xf32, #tpu.memory_space<vmem>>, vector<1x128xf32>
    %c0_9 = arith.constant 0 : index
    %c0_10 = arith.constant 0 : index
    %19 = vector.load %arg3[%c0_9, %c0_10] : memref<1x128xf32, #tpu.memory_space<vmem>>, vector<1x128xf32>
    %cst_11 = arith.constant 1.000000e+00 : f32
    %20 = vector.broadcast %cst_11 : f32 to vector<1x128xf32>
    %21 = arith.mulf %20, %2 : vector<1x128xf32>
    %cst_12 = arith.constant 0.000000e+00 : f32
    %22 = vector.broadcast %cst_12 : f32 to vector<1x128xf32>
    %23 = arith.mulf %22, %18 : vector<1x128xf32>
    %24 = arith.addf %21, %23 : vector<1x128xf32>
    %cst_13 = arith.constant 1.000000e+00 : f32
    %25 = vector.broadcast %cst_13 : f32 to vector<1x128xf32>
    %26 = arith.mulf %25, %5 : vector<1x128xf32>
    %cst_14 = arith.constant 0.000000e+00 : f32
    %27 = vector.broadcast %cst_14 : f32 to vector<1x128xf32>
    %28 = arith.mulf %27, %19 : vector<1x128xf32>
    %29 = arith.addf %26, %28 : vector<1x128xf32>
    %c0_15 = arith.constant 0 : index
    %c0_16 = arith.constant 0 : index
    %30 = vector.load %arg5[%c0_15, %c0_16] : memref<1x128xf32, #tpu.memory_space<vmem>>, vector<1x128xf32>
    tpu.vector_store %arg5[%c0_15, %c0_16], %24 {strides = array<i32>} : memref<1x128xf32, #tpu.memory_space<vmem>>, vector<1x128xf32>,
    %c0_17 = arith.constant 0 : index
    %c0_18 = arith.constant 0 : index
    %31 = vector.load %arg6[%c0_17, %c0_18] : memref<1x128xf32, #tpu.memory_space<vmem>>, vector<1x128xf32>
    tpu.vector_store %arg6[%c0_17, %c0_18], %29 {strides = array<i32>} : memref<1x128xf32, #tpu.memory_space<vmem>>, vector<1x128xf32>,
    return
  }
  func.func @transform_0(%arg0: i32) -> (i32, i32) {
    %c0_i32 = arith.constant 0 : i32
    %c0_i32_0 = arith.constant 0 : i32
    return %c0_i32, %arg0 : i32, i32
  }
  func.func @transform_1(%arg0: i32) -> (i32, i32) {
    %c0_i32 = arith.constant 0 : i32
    %c0_i32_0 = arith.constant 0 : i32
    return %c0_i32, %arg0 : i32, i32
  }
  func.func @transform_2(%arg0: i32) -> (i32, i32) {
    %c0_i32 = arith.constant 0 : i32
    %c0_i32_0 = arith.constant 0 : i32
    return %c0_i32, %arg0 : i32, i32
  }
  func.func @transform_3(%arg0: i32) -> (i32, i32) {
    %c0_i32 = arith.constant 0 : i32
    %c0_i32_0 = arith.constant 0 : i32
    return %c0_i32, %arg0 : i32, i32
  }
  func.func @transform_4(%arg0: i32) -> (i32, i32) {
    %c0_i32 = arith.constant 0 : i32
    %c0_i32_0 = arith.constant 0 : i32
    return %c0_i32, %arg0 : i32, i32
  }
  func.func @transform_5(%arg0: i32) -> (i32, i32) {
    %c0_i32 = arith.constant 0 : i32
    %c0_i32_0 = arith.constant 0 : i32
    return %c0_i32, %arg0 : i32, i32
  }
}

</mosaic_0001>

<bundles_post_ra>
// kernel: tpu_custom_call.1
= control target key start
LH: loop header
LB: loop body
LE: loop exit
PB: predicated region body
PF: predicated region fallthrough
CT: control target
= control target key end

     0   :  { %s1150_s0 = inlined_call_operand.hbm [shape: f32[8,256], index: 0, kind: input, shape index: {}]   ;;  %s1151_s1 = inlined_call_operand.hbm [shape: f32[1,256], index: 1, kind: input, shape index: {}]   ;;  %s1152_s2 = inlined_call_operand.hbm [shape: f32[1,256], index: 2, kind: input, shape index: {}]   ;;  %s1153_s3 = inlined_call_operand.hbm [shape: f32[8,256], index: 3, kind: output, shape index: {0}]   ;;  %s1154_s4 = inlined_call_operand.hbm [shape: f32[1,256], index: 4, kind: output, shape index: {1}]   ;;  %s1155_s5 = inlined_call_operand.hbm [shape: f32[1,256], index: 5, kind: output, shape index: {2}]  }
   0x1   :  { %1158 = sst [smem:[#allocation18_spill]] %s1151_s1 }
   0x2   :  { %11 = vsyncpa [#allocation3], 0 }
   0x3   :  { %13 = vsyncpa [#allocation3 + $0x1], 0 }
   0x4   :  { %14 = vsyncpa [#allocation6], 0 }
   0x5   :  { %16 = vsyncpa [#allocation6 + $0x1], 0 }
   0x6   :  { %17 = vsyncpa [#allocation4], 0 }
   0x7   :  { %19 = vsyncpa [#allocation4 + $0x1], 0 }
   0x8   :  { %20 = vsyncpa [#allocation10], 0 }
   0x9   :  { %22 = vsyncpa [#allocation10 + $0x1], 0  ;;  %s908_s18 = smov 0   ;;  %s910_s19 = smov 0  }
   0xa   :  { %s912_s20 = smov 0   ;;  %s914_s21 = smov 0  }
   0xb LB: > { %1159 = sst [smem:[#allocation16_spill]] %s872_s20  ;;  %s929_s22 = sadd.s32 4294967295, %s876_s21   ;;  %s876_s21 = sphi %s914_s21, %s1172_s21   ;;  %s872_s20 = sphi %s912_s20, %s1169_s20   ;;  %s868_s19 = sphi %s910_s19, %s1171_s19   ;;  %s864_s18 = sphi %s908_s18, %s1170_s18  }
   0xc   : > { %s1156_s23 = sadd.s32 4294967294, %s876_s21   ;;  %s933_s24 = sadd.s32 1, %s876_s21  }
   0xd   : > { %s35_s25 = sadd.s32 1, %s872_s20  ;;  %s32_s26 = ssub.s32 %s876_s21, %s933_s24 }
   0xe   : > { %p42_p0 = scmp.ne.s32.totalorder %s872_s20, %s868_s19  ;;  %p33_p1 = scmp.eq.s32.totalorder %s32_s26, 0 }
   0xf   : > { %p43_p2 = scmp.eq.s32.totalorder %s876_s21, 0  ;;  %p48_p3 = scmp.ne.s32.totalorder %s868_s19, %s864_s18 }
  0x10   : > { %p49_p4 = scmp.eq.s32.totalorder %s929_s22, 0  ;;  %p124_p7 = scmp.eq.s32.totalorder %s929_s22, 1 }
  0x11   : > { %s945_s27 = scalar_select %p33_p1, %s872_s20, %s35_s25  }
  0x12   : > { %p44_p5 = por %p43_p2, %p42_p0  ;;  %p947_p6 = por %p49_p4, %p48_p3 }
  0x13   : > { %1160 = sst [smem:[#allocation17_spill]] %s945_s27  ;;  %p130_p8 = scmp.eq.s32.totalorder %s1156_s23, 1 }
  0x14   : > { %p578_p9 = scmp.ge.s32.totalorder %s876_s21, 2  ;;  %p620_p10 = scmp.lt.s32.totalorder %s876_s21, 2 }
  0x15   : > { %p956_p11 = por %p124_p7, %p42_p0  ;;  %p960_p12 = por %p130_p8, %p48_p3 }
  0x16   : > { %s965_s6 = sand.u32 1, %s872_s20   ;;  %p967_p13 = pnand %p620_p10, %p44_p5 }
  0x17   : > { %s221_s8 = sand.u32 1, %s876_s21   ;;  %s1165_s1 = sld [smem:[#allocation18_spill]] }
  0x18   : > { %s224_s12 = scalar_lea.vmem [#allocation5], %s965_s6  ;;  %p581_p0 = scmp.ge.s32.totalorder %s876_s21, 1 }
  0x19   : > { %s231_s13 = sshll.u32 %s224_s12, 4  ;;  %s978_s15 = scalar_lea.sflag [#allocation6], %s221_s8  ;;  %s232_s13 = int_to_ptr.vmem [resolvable:$true] %s231_s13 }
  0x1a   : > { %p660_p2 = pneg %p967_p13 }
  0x1d   : > { %s227_s11 = scalar_lea.hbm %s1165_s1, %s876_s21  ;;  %s663_s9 = scalar_lea.hbm %s1165_s1, 2 }
  0x1e   : > { %s229_s14 = sshll.u32 %s227_s11, 4  ;;  %s230_s14 = int_to_ptr.hbm [resolvable:$true] %s229_s14 }
  0x1f   : > { %s656_s16 = sshra.s32 %s230_s14, 4  ;;  %s657_s16 = int_to_ptr.hbm [resolvable:$true] %s656_s16 }
  0x20   : > { %s658_s17 = scalar_lea.hbm %s657_s16, 1  ;;  %p664_p5 = scmp.lt.s32.totalorder %s657_s16, %s1165_s1 }
  0x21   : > { %p659_p1 = scmp.ne.s32.totalorder %s657_s16, %s658_s17  ;;  %p665_p7 = scmp.lt.s32.totalorder %s663_s9, %s658_s17 }
  0x23   : > { %p661_p3 = pnand %p660_p2, %p659_p1  ;;  %p666_p8 = por %p665_p7, %p664_p5 }
  0x25   : > { %p662_p4 = pneg %p661_p3 }
  0x27   : > { %p667_p10 = pnand %p666_p8, %p662_p4 }
  0x29   : > { %670 = shalt.err (!%p667_p10)
}
  0x2a   : > { %606 = dma.hbm_to_vmem [thread:$0]  (!%p967_p13), %s230_s14, 16, %s232_s13, %s978_s15  }
  0x2b   : > { %p253_p1 = scmp.lt.s32.totalorder %s876_s21, 3  ;;  %s579_s8 = sshll.u32 %s965_s6, 3 }
  0x2c   : > { %s580_s12 = sshll.u32 %s876_s21, 3  ;;  %s206_s9 = scalar_lea.vmem [#allocation2], %s579_s8 }
  0x2d   : > { %p999_p3 = pnand %p581_p0, %p253_p1  ;;  %s210_s26 = scalar_lea.hbm %s1150_s0, %s580_s12 }
  0x2e   : > { %s214_s10 = sshll.u32 %s206_s9, 4  ;;  %s212_s11 = sshll.u32 %s210_s26, 4  ;;  %s215_s10 = int_to_ptr.vmem [resolvable:$true] %s214_s10  ;;  %s213_s11 = int_to_ptr.hbm [resolvable:$true] %s212_s11 }
  0x2f   : > { %s203_s23 = scalar_lea.sflag [#allocation3], %s965_s6  ;;  %s686_s13 = sshra.s32 %s213_s11, 4  ;;  %s687_s13 = int_to_ptr.hbm [resolvable:$true] %s686_s13 }
  0x30   : > { %s688_s14 = scalar_lea.hbm %s687_s13, 8  ;;  %s693_s20 = scalar_lea.hbm %s1150_s0, 16 }
  0x31   : > { %p689_p4 = scmp.ne.s32.totalorder %s687_s13, %s688_s14  ;;  %p694_p7 = scmp.lt.s32.totalorder %s687_s13, %s1150_s0 }
  0x32   : > { %p695_p8 = scmp.lt.s32.totalorder %s693_s20, %s688_s14 }
  0x33   : > { %p691_p0 = pnand %p689_p4, %p660_p2 }
  0x34   : > { %p696_p10 = por %p695_p8, %p694_p7 }
  0x35   : > { %p692_p5 = pneg %p691_p0 }
  0x37   : > { %p697_p1 = pnand %p696_p10, %p692_p5 }
  0x39   : > { %700 = shalt.err (!%p697_p1)
}
  0x3a   : > { %603 = dma.hbm_to_vmem [thread:$0]  (!%p967_p13), %s213_s11, 128, %s215_s10, %s203_s23  }
  0x3b   : > { %s244_s26 = scalar_lea.hbm %s1152_s2, %s876_s21  ;;  %s241_s1 = scalar_lea.vmem [#allocation7], %s965_s6 }
  0x3c   : > { %s248_s27 = sshll.u32 %s241_s1, 4  ;;  %s246_s9 = sshll.u32 %s244_s26, 4  ;;  %s249_s27 = int_to_ptr.vmem [resolvable:$true] %s248_s27  ;;  %s247_s9 = int_to_ptr.hbm [resolvable:$true] %s246_s9 }
  0x3d   : > { %s716_s13 = sshra.s32 %s247_s9, 4  ;;  %s723_s23 = scalar_lea.hbm %s1152_s2, 2  ;;  %s717_s13 = int_to_ptr.hbm [resolvable:$true] %s716_s13 }
  0x3e   : > { %s718_s20 = scalar_lea.hbm %s717_s13, 1  ;;  %p724_p7 = scmp.lt.s32.totalorder %s717_s13, %s1152_s2 }
  0x3f   : > { %p719_p4 = scmp.ne.s32.totalorder %s717_s13, %s718_s20  ;;  %p725_p8 = scmp.lt.s32.totalorder %s723_s23, %s718_s20 }
  0x41   : > { %p721_p0 = pnand %p719_p4, %p660_p2  ;;  %p726_p10 = por %p725_p8, %p724_p7 }
  0x43   : > { %p722_p5 = pneg %p721_p0 }
  0x45   : > { %p727_p1 = pnand %p726_p10, %p722_p5 }
  0x47   : > { %730 = shalt.err (!%p727_p1)
}
  0x48   : > { %609 = dma.hbm_to_vmem [thread:$0]  (!%p967_p13), %s247_s9, 16, %s249_s27, %s978_s15  }
  0x49   : > { %257 = sbr.rel (%p999_p3) target bundleno = 135 (0x87), region = 32  ;;  %s1038_s6 = sand.u32 (!%p999_p3), 1, %s868_s19  }
  0x4a   : > { %s582_s12 = sshll.u32 (!%p999_p3), %s1038_s6, 3  ;;  %s260_s8 = scalar_lea.sflag (!%p999_p3), [#allocation3], %s1038_s6 }
  0x4b   : > { %s263_s25 = scalar_lea.vmem (!%p999_p3), [#allocation2], %s582_s12 }
  0x4e   : > { %847 = dma.done.wait (%p947_p6), %s260_s8, 128  }
  0x4f   : > { %849 = vsyncadd (%p947_p6), %s260_s8, 4294967168  ;;  %s269_s7 = sand.u32 1, %s929_s22   ;;  %s272_s16 = scalar_lea.vmem [#allocation5], %s1038_s6 }
  0x50   : > { %s270_s15 = scalar_lea.sflag [#allocation6], %s269_s7 }
  0x51   : > { %851 = dma.done.wait (%p947_p6), %s270_s15, 32  }
  0x52   : > { %853 = vsyncadd (%p947_p6), %s270_s15, 4294967264  ;;  %v1056_v0 = vld [vmem:[%s263_s25] sm:$0xff]  ;;  %s400_s1 = scalar_lea.hbm %s1154_s4, %s929_s22  ;;  %s318_s27 = scalar_lea.vmem [#allocation9], %s1038_s6 }
  0x53   : > { %v326_v1 = vrot.slane %v1056_v0, 4  ;;  %v360_v6 = vld [vmem:[%s272_s16] sm:$0x1]  ;;  %s1066_s9 = sshll.u32 %s318_s27, 4  ;;  %s281_s13 = scalar_lea.vmem [#allocation7], %s1038_s6  ;;  %s403_s9 = int_to_ptr.vmem [resolvable:$true] %s1066_s9 }
  0x54   : > { %v362_v11 = vmul.f32 0.0, %v360_v6  ;;  %v361_v12 = vld [vmem:[%s281_s13] sm:$0x1]  ;;  %s413_s17 = scalar_lea.hbm %s1155_s5, %s929_s22  ;;  %s1073_s23 = sshll.u32 %s400_s1, 4  ;;  %s405_s23 = int_to_ptr.hbm [resolvable:$true] %s1073_s23 }
  0x55   : > { %v327_v2 = vmin.f32 %v1056_v0, %v326_v1  ;;  %v333_v3 = vmax.f32 %v1056_v0, %v326_v1  ;;  %v364_v15 = vmul.f32 0.0, %v361_v12  ;;  %s324_s10 = scalar_lea.vmem [#allocation11], %s1038_s6  ;;  %s1079_s8 = sshll.u32 %s413_s17, 4  ;;  %s418_s8 = int_to_ptr.hbm [resolvable:$true] %s1079_s8 }
  0x56   : > { %s1077_s11 = sshll.u32 %s324_s10, 4  ;;  %s374_s25 = scalar_lea.sflag [#allocation10], %s269_s7  ;;  %s416_s11 = int_to_ptr.vmem [resolvable:$true] %s1077_s11 }
  0x57   : > { %v328_v4 = vrot.slane %v327_v2, 2  ;;  %v334_v5 = vrot.slane %v333_v3, 2  ;;  %s760_s15 = sshra.s32 %s405_s23, 4  ;;  %s766_s1 = scalar_lea.hbm %s1154_s4, 2  ;;  %s761_s15 = int_to_ptr.hbm [resolvable:$true] %s760_s15 }
  0x58   : > { %s762_s16 = scalar_lea.hbm %s761_s15, 1  ;;  %p767_p3 = scmp.lt.s32.totalorder %s761_s15, %s1154_s4 }
  0x59   : > { %v329_v7 = vmin.f32 %v327_v2, %v328_v4  ;;  %v335_v8 = vmax.f32 %v333_v3, %v334_v5  ;;  %p763_p6 = scmp.ne.s32.totalorder %s761_s15, %s762_s16  ;;  %p768_p4 = scmp.lt.s32.totalorder %s766_s1, %s762_s16 }
  0x5b   : > { %v330_v9 = vrot.slane %v329_v7, 1  ;;  %v336_v10 = vrot.slane %v335_v8, 1  ;;  %p764_p13 = pnand %p763_p6, %p956_p11  ;;  %p769_p0 = por %p768_p4, %p767_p3 }
  0x5d   : > { %v331_v13 = vmin.f32 %v329_v7, %v330_v9  ;;  %v337_v14 = vmax.f32 %v335_v8, %v336_v10  ;;  %p765_p2 = pneg %p764_p13 }
  0x5f   : > { %v338_v16 = vsub.f32 %v337_v14, %v331_v13  ;;  %v363_v17 = vadd.f32 %v362_v11, %v331_v13  ;;  %p770_p5 = pnand %p769_p0, %p765_p2 }
  0x61   : > { %654 = vrcp.f32 %v338_v16  ;;  %366 = vst [vmem:[%s318_s27] sm:$0x1] %v363_v17  ;;  %v365_v18 = vadd.f32 %v364_v15, %v338_v16 }
  0x62   : > { %773 = shalt.err (!%p770_p5)
}
  0x63   : > { %595 = dma.vmem_to_hbm [thread:$0]  (%p956_p11), %s403_s9, 16, %s405_s23, %s374_s25   ;;  %367 = vst [vmem:[%s324_s10] sm:$0x1] %v365_v18 }
  0x64   : > { %s788_s7 = sshra.s32 %s418_s8, 4  ;;  %s794_s15 = scalar_lea.hbm %s1155_s5, 2  ;;  %s789_s7 = int_to_ptr.hbm [resolvable:$true] %s788_s7 }
  0x65   : > { %s790_s27 = scalar_lea.hbm %s789_s7, 1  ;;  %p795_p1 = scmp.lt.s32.totalorder %s789_s7, %s1155_s5 }
  0x66   : > { %p791_p7 = scmp.ne.s32.totalorder %s789_s7, %s790_s27  ;;  %p796_p6 = scmp.lt.s32.totalorder %s794_s15, %s790_s27 }
  0x68   : > { %p792_p8 = pnand %p791_p7, %p956_p11  ;;  %p797_p13 = por %p796_p6, %p795_p1 }
  0x6a   : > { %p793_p10 = pneg %p792_p8 }
  0x6c   : > { %p798_p2 = pnand %p797_p13, %p793_p10 }
  0x6e   : > { %801 = shalt.err (!%p798_p2)
}
  0x6f   : > { %596 = dma.vmem_to_hbm [thread:$0]  (%p956_p11), %s416_s11, 16, %s418_s8, %s374_s25   ;;  %v655_v19 = vpop.eup %654  ;;  %v350_v21 = vand.u32 2147483648, %v338_v16  ;;  %vm344_vm0 = vweird.f32 %v338_v16  ;;  %v348_v23 = vand.u32 2147483647, %v338_v16 }
  0x70   : > { %v340_v20 = vmul.f32 %v655_v19, %v338_v16  ;;  %vm345_vm1 = vweird.f32 %v655_v19  ;;  %s585_s9 = sshll.u32 %s929_s22, 3  ;;  %s312_s8 = scalar_lea.vmem [#allocation8], %s582_s12 }
  0x71   : > { %vm346_vm2 = vmor %vm344_vm0, %vm345_vm1  ;;  %v351_v25 = vor.u32 1.1754944e-38, %v350_v21  ;;  %vm349_vm3 = vcmp.eq.f32.partialorder %v348_v23, 8.507059e+37  ;;  %s387_s11 = scalar_lea.hbm %s1153_s3, %s585_s9  ;;  %s389_s25 = sshll.u32 %s312_s8, 4  ;;  %s390_s25 = int_to_ptr.vmem [resolvable:$true] %s389_s25 }
  0x72   : > { %v341_v22 = vsub.f32 1.0, %v340_v20  ;;  %s391_s26 = sshll.u32 %s387_s11, 4  ;;  %s369_s22 = scalar_lea.sflag [#allocation4], %s1038_s6  ;;  %s392_s26 = int_to_ptr.hbm [resolvable:$true] %s391_s26 }
  0x73   : > { %s816_s1 = sshra.s32 %s392_s26, 4  ;;  %s822_s27 = scalar_lea.hbm %s1153_s3, 16  ;;  %s817_s1 = int_to_ptr.hbm [resolvable:$true] %s816_s1 }
  0x74   : > { %v342_v24 = vmul.f32 %v655_v19, %v341_v22  ;;  %s818_s13 = scalar_lea.hbm %s817_s1, 8  ;;  %p823_p5 = scmp.lt.s32.totalorder %s817_s1, %s1153_s3 }
  0x75   : > { %p819_p3 = scmp.ne.s32.totalorder %s817_s1, %s818_s13  ;;  %p824_p7 = scmp.lt.s32.totalorder %s822_s27, %s818_s13 }
  0x76   : > { %v343_v26 = vadd.f32 %v655_v19, %v342_v24 }
  0x77   : > { %p820_p4 = pnand %p819_p3, %p956_p11  ;;  %p825_p8 = por %p824_p7, %p823_p5 }
  0x78   : > { %v347_v27 = vsel %vm346_vm2, %v655_v19, %v343_v26 }
  0x79   : > { %v352_v28 = vsel %vm349_vm3, %v351_v25, %v347_v27  ;;  %p821_p0 = pneg %p820_p4 }
  0x7a   : > { %v353_v29 = vmul.f32 2.0, %v352_v28 }
  0x7b   : > { %p826_p10 = pnand %p825_p8, %p821_p0 }
  0x7c   : > { %v354_v30 = vmul.f32 %v353_v29, %v331_v13  ;;  %v357_v32 = vmul.f32 %v353_v29, %v1056_v0 }
  0x7e   : > { %v355_v31 = vadd.f32 1.0, %v354_v30 }
  0x80   : > { %v356_v33 = vsub.f32 0.0, %v355_v31 }
  0x82   : > { %v358_v34 = vadd.f32 %v357_v32, %v356_v33 }
  0x84   : > { %359 = vst [vmem:[%s312_s8] sm:$0xff] %v358_v34 }
  0x85   : > { %829 = shalt.err (!%p826_p10)
}
  0x86   : > { %594 = dma.vmem_to_hbm [thread:$0]  (%p956_p11), %s390_s25, 128, %s392_s26, %s369_s22  }
  0x87 PF: > { %s429_s6 = sand.u32 1, %s864_s18   ;;  %p611_p1 = pnand %p578_p9, %p960_p12 }
  0x88   : > { %s430_s17 = scalar_lea.sflag [#allocation4], %s429_s6 }
  0x89   : > { %p612_p6 = pneg %p611_p1 }
  0x8b   : > { %855 = dma.done.wait (%p612_p6), %s430_s17, 128  }
  0x8c   : > { %857 = vsyncadd (%p612_p6), %s430_s17, 4294967168  ;;  %s1167_s15 = sadd.s32 4294967294, %s876_s21  }
  0x8d   : > { %s439_s16 = sand.u32 1, %s1167_s15  }
  0x8e   : > { %s440_s28 = scalar_lea.sflag [#allocation10], %s439_s16 }
  0x8f   : > { %859 = dma.done.wait (%p612_p6), %s440_s28, 32  }
  0x90   : > { %861 = vsyncadd (%p612_p6), %s440_s28, 4294967264  ;;  %s1168_s29 = sld [smem:[#allocation16_spill]]  ;;  %p25_p11 = scmp.ge.s32.totalorder %s933_s24, 4  }
  0x91   : > { %s1169_s20 = sld [smem:[#allocation17_spill]]  ;;  %s1170_s18 = smov %s868_s19 }
  0x92   : > { %s1172_s21 = smov %s933_s24  ;;  %27 = sbr.rel (!%p25_p11) target bundleno = 11 (0xb), region = 133 }
  0x96   : > { %s1171_s19 = smov %s1168_s29 }
  0x97   :  { %454 = vsyncpa [#allocation3], 1 }
  0x98   :  { %456 = vsyncpa [#allocation3 + $0x1], 1 }
  0x99   :  { %457 = vsyncpa [#allocation6], 1 }
  0x9a   :  { %459 = vsyncpa [#allocation6 + $0x1], 1 }
  0x9b   :  { %460 = vsyncpa [#allocation4], 1 }
  0x9c   :  { %462 = vsyncpa [#allocation4 + $0x1], 1 }
  0x9d   :  { %463 = vsyncpa [#allocation10], 1 }
  0x9e   :  { %465 = vsyncpa [#allocation10 + $0x1], 1 }

</bundles_post_ra>
